<compile_context>
chip_gen: v5e
topology: v5e:2x2
jax: 0.10.0
libtpu: 0.0.40
codegen_flags: <defaults>
</compile_context>

<pallas_src>
import functools

import jax
import jax.numpy as jnp
from jax.experimental import pallas as pl
from jax.experimental.pallas import tpu as pltpu

EPS = 1e-08
LANE = 128
SUB = 8

NSPLIT = 2           # megacore split for v7x; harmless (extra sequential step) on v5e/v6e
_TILE_G_MAX = 256    # (256, 8, 128) f32 block = 1 MiB per input per buffer
_TILE_R_MAX = 512    # (512, 128) f32 block = 256 KiB per input per buffer (KLD path)
_L2RES_TILE_BYTES = 2 << 20


def _round_up(x, m):
    return ((x + m - 1) // m) * m


def _softplus(x):
    # numerically-stable softplus, elementwise on the VPU (f32)
    return jnp.maximum(x, 0.0) + jnp.log1p(jnp.exp(-jnp.abs(x)))


# ----------------------------------------------------------------------------
# MaskedLoss (distance_type='L2', rescale=False):
#   sum((preds*mask - targets*mask)^2) / ((mask > 0).sum() + 1)
# ----------------------------------------------------------------------------
def _masked_l2_kernel(p_ref, t_ref, m_ref, sse_ref, cnt_ref):
    # sse_ref / cnt_ref are (8,128) resident accumulator blocks (one per core split);
    # init at the first step of the reduction axis, accumulate every step,
    # write-back happens automatically when the output block index changes.
    @pl.when(pl.program_id(1) == 0)
    def _():
        sse_ref[...] = jnp.zeros_like(sse_ref)
        cnt_ref[...] = jnp.zeros_like(cnt_ref)

    p = p_ref[...].astype(jnp.float32)
    t = t_ref[...].astype(jnp.float32)
    m = m_ref[...].astype(jnp.float32)
    d = (p - t) * m                                        # (tile_g, 8, 128)
    sse_ref[...] += jnp.sum(d * d, axis=0)                 # -> (8, 128), no XLU reduce
    cnt_ref[...] += jnp.sum((m > 0.0).astype(jnp.float32), axis=0)


def masked_l2_loss(preds, targets, mask):
    if mask is None:
        # BaseLoss can be called without a dynamic mask; behave as an all-valid mask.
        mask = jnp.ones(preds.shape, preds.dtype)

    n = preds.size
    chunk = SUB * LANE
    groups = -(-n // chunk)
    tile_g = min(_TILE_G_MAX, max(1, -(-groups // NSPLIT)))
    groups_p = _round_up(groups, tile_g * NSPLIT)
    total_p = groups_p * chunk

    def prep(x):
        x = x.reshape(-1)
        if total_p > n:
            x = jnp.pad(x, (0, total_p - n))   # zero pad: adds 0 to sse and 0 to cnt
        return x.reshape(groups_p, SUB, LANE)

    p, t, m = prep(preds), prep(targets), prep(mask)

    steps = groups_p // (tile_g * NSPLIT)
    in_spec = pl.BlockSpec((tile_g, SUB, LANE), lambda c, i: (c * steps + i, 0, 0))
    out_spec = pl.BlockSpec((SUB, LANE), lambda c, i: (c, 0))

    sse, cnt = pl.pallas_call(
        _masked_l2_kernel,
        out_shape=(jax.ShapeDtypeStruct((NSPLIT * SUB, LANE), jnp.float32),
                   jax.ShapeDtypeStruct((NSPLIT * SUB, LANE), jnp.float32)),
        grid_spec=pltpu.PrefetchScalarGridSpec(
            num_scalar_prefetch=0,
            grid=(NSPLIT, steps),
            in_specs=[in_spec, in_spec, in_spec],
            out_specs=(out_spec, out_spec)),
        compiler_params=pltpu.CompilerParams(
            dimension_semantics=("parallel", "arbitrary")),
    )(p, t, m)
    return jnp.sum(sse) / (jnp.sum(cnt) + 1.0)


# ----------------------------------------------------------------------------
# KL( N(loc, softplus(raw)+eps) || N(0, 1) ).mean()   (state_params branch)
# ----------------------------------------------------------------------------
def _kld_state_kernel(loc_ref, rs_ref, acc_ref, *, n_valid, tile_r):
    i = pl.program_id(0)

    @pl.when(i == 0)
    def _():
        acc_ref[...] = jnp.zeros_like(acc_ref)

    loc = loc_ref[...].astype(jnp.float32)
    scale = _softplus(rs_ref[...].astype(jnp.float32)) + EPS
    kld = -jnp.log(scale) + 0.5 * (scale * scale + loc * loc) - 0.5

    r_ids = jax.lax.broadcasted_iota(jnp.int32, (tile_r, LANE), 0)
    l_ids = jax.lax.broadcasted_iota(jnp.int32, (tile_r, LANE), 1)
    elem = (i * tile_r + r_ids) * LANE + l_ids
    valid = (elem < n_valid).astype(jnp.float32)
    acc_ref[...] += jnp.sum(kld * valid, axis=0, keepdims=True)


def _prep_lanes(x, rows_p):
    n = x.size
    x = x.reshape(-1)
    pad = rows_p * LANE - n
    if pad:
        x = jnp.pad(x, (0, pad))
    return x.reshape(rows_p, LANE)


def kld_vs_std_normal(raw_params):
    d = raw_params.shape[-1] // 2
    loc, rs = raw_params[..., :d], raw_params[..., d:]   # chunk in wrapper -> lane-dense kernel
    n = loc.size
    rows = -(-n // LANE)
    tile_r = min(_TILE_R_MAX, _round_up(rows, SUB))
    rows_p = _round_up(rows, tile_r)
    loc2, rs2 = _prep_lanes(loc, rows_p), _prep_lanes(rs, rows_p)

    kernel = functools.partial(_kld_state_kernel, n_valid=n, tile_r=tile_r)
    acc = pl.pallas_call(
        kernel,
        out_shape=jax.ShapeDtypeStruct((1, LANE), jnp.float32),
        grid_spec=pltpu.PrefetchScalarGridSpec(
            num_scalar_prefetch=0,
            grid=(rows_p // tile_r,),
            in_specs=[pl.BlockSpec((tile_r, LANE), lambda i: (i, 0))] * 2,
            out_specs=pl.BlockSpec((1, LANE), lambda i: (0, 0))),
        compiler_params=pltpu.CompilerParams(dimension_semantics=("arbitrary",)),
    )(loc2, rs2)
    return jnp.sum(acc) / n


# ----------------------------------------------------------------------------
# KL( q || p ).mean() for two raw-param Gaussians  (infer_q/p branch)
# ----------------------------------------------------------------------------
def _kld_qp_kernel(q_loc_ref, q_rs_ref, p_loc_ref, p_rs_ref, acc_ref, *, n_valid, tile_r):
    i = pl.program_id(0)

    @pl.when(i == 0)
    def _():
        acc_ref[...] = jnp.zeros_like(acc_ref)

    q_loc = q_loc_ref[...].astype(jnp.float32)
    p_loc = p_loc_ref[...].astype(jnp.float32)
    q_scale = _softplus(q_rs_ref[...].astype(jnp.float32)) + EPS
    p_scale = _softplus(p_rs_ref[...].astype(jnp.float32)) + EPS
    kld = (jnp.log(p_scale) - jnp.log(q_scale)
           + (q_scale * q_scale + (q_loc - p_loc) ** 2) / (2.0 * p_scale * p_scale)
           - 0.5)

    r_ids = jax.lax.broadcasted_iota(jnp.int32, (tile_r, LANE), 0)
    l_ids = jax.lax.broadcasted_iota(jnp.int32, (tile_r, LANE), 1)
    elem = (i * tile_r + r_ids) * LANE + l_ids
    valid = (elem < n_valid).astype(jnp.float32)
    acc_ref[...] += jnp.sum(kld * valid, axis=0, keepdims=True)


def kld_q_vs_p(q_params, p_params):
    d = q_params.shape[-1] // 2
    q_loc, q_rs = q_params[..., :d], q_params[..., d:]
    p_loc, p_rs = p_params[..., :d], p_params[..., d:]
    n = q_loc.size
    rows = -(-n // LANE)
    tile_r = min(_TILE_R_MAX, _round_up(rows, SUB))
    rows_p = _round_up(rows, tile_r)
    inputs = [_prep_lanes(x, rows_p) for x in (q_loc, q_rs, p_loc, p_rs)]

    kernel = functools.partial(_kld_qp_kernel, n_valid=n, tile_r=tile_r)
    acc = pl.pallas_call(
        kernel,
        out_shape=jax.ShapeDtypeStruct((1, LANE), jnp.float32),
        grid_spec=pltpu.PrefetchScalarGridSpec(
            num_scalar_prefetch=0,
            grid=(rows_p // tile_r,),
            in_specs=[pl.BlockSpec((tile_r, LANE), lambda i: (i, 0))] * 4,
            out_specs=pl.BlockSpec((1, LANE), lambda i: (0, 0))),
        compiler_params=pltpu.CompilerParams(dimension_semantics=("arbitrary",)),
    )(*inputs)
    return jnp.sum(acc) / n


# ----------------------------------------------------------------------------
# torch.norm(updates, p=2, dim=2).mean()
# ----------------------------------------------------------------------------
def _l2_res_kernel(u_ref, acc_ref):
    @pl.when(pl.program_id(0) == 0)
    def _():
        acc_ref[...] = jnp.zeros_like(acc_ref)

    u = u_ref[...].astype(jnp.float32)                 # (tile_bt, C, HWp)
    ss = jnp.sum(u * u, axis=1)                        # (tile_bt, HWp)
    acc_ref[...] += jnp.sum(jnp.sqrt(ss), axis=0, keepdims=True)   # (1, HWp)


def l2_residual(updates):
    b, t, c, h, w = updates.shape
    bt, hw = b * t, h * w
    hwp = _round_up(hw, LANE)
    u = updates.reshape(bt, c, hw)
    if hwp > hw:
        u = jnp.pad(u, ((0, 0), (0, 0), (0, hwp - hw)))    # sqrt(0) contributes 0

    itemsize = jnp.dtype(u.dtype).itemsize
    tile_bt = max(1, min(bt, _L2RES_TILE_BYTES // (c * hwp * itemsize)))
    bt_p = _round_up(bt, tile_bt)
    if bt_p > bt:
        u = jnp.pad(u, ((0, bt_p - bt), (0, 0), (0, 0)))   # zero rows contribute 0

    acc = pl.pallas_call(
        _l2_res_kernel,
        out_shape=jax.ShapeDtypeStruct((1, hwp), jnp.float32),
        grid_spec=pltpu.PrefetchScalarGridSpec(
            num_scalar_prefetch=0,
            grid=(bt_p // tile_bt,),
            in_specs=[pl.BlockSpec((tile_bt, c, hwp), lambda i: (i, 0, 0))],
            out_specs=pl.BlockSpec((1, hwp), lambda i: (0, 0))),
        compiler_params=pltpu.CompilerParams(dimension_semantics=("arbitrary",)),
    )(u)
    return jnp.sum(acc) / (bt * hw)


# ----------------------------------------------------------------------------
# BaseLoss forward (JAX wrapper; hot paths run in the Pallas kernels above)
# ----------------------------------------------------------------------------
class WeightShedule:
    # TODO(synk): original WeightShedule source not provided; deterministic linear-ramp stand-in.
    def __init__(self, start_step=0, end_step=100, start_weight=0.0, end_weight=1.0):
        self.start_step = start_step
        self.end_step = end_step
        self.start_weight = start_weight
        self.end_weight = end_weight

    def __call__(self, step):
        if step is None:
            return self.end_weight
        span = max(self.end_step - self.start_step, 1)
        frac = min(max((step - self.start_step) / span, 0.0), 1.0)
        return self.start_weight + frac * (self.end_weight - self.start_weight)


class BaseLossPallas:
    def __init__(self, setting):
        assert setting['name'] == 'masked'
        self.distance_type = setting['args'].get('distance_type', 'L2')
        self.rescale = setting['args'].get('rescale', False)
        assert self.distance_type == 'L2' and not self.rescale  # path exercised here
        self.lambda_state = WeightShedule(**setting['state_shedule'])
        self.lambda_infer = WeightShedule(**setting['inference_shedule'])
        self.lambda_l2_res = WeightShedule(**setting['residuals_shedule'])
        self.dist_scale = setting.get('dist_scale', 1)
        self.ndvi = setting.get('ndvi', False)  # TODO(synk): NDVI/landcover branch not exercised (ndvi=False)

    def __call__(self, preds, batch, aux, current_step=None):
        logs = {}
        T = preds.shape[1]
        targs = batch['dynamic'][0][:, -T:, ...]
        masks = batch['dynamic_mask'][0][:, -T:, ...] if len(batch['dynamic_mask']) > 0 else None

        dist = masked_l2_loss(preds, targs, masks)
        logs['distance'] = dist
        loss = dist * self.dist_scale

        if 'state_params' in aux:
            kld_state = kld_vs_std_normal(aux['state_params'])
            lambda_state = self.lambda_state(current_step)
            loss = loss + lambda_state * kld_state
            logs['kld_state'] = kld_state
            logs['lambda_kld_state'] = lambda_state

        if set(['infer_q_params', 'infer_p_params']).issubset(set(aux)):
            assert len(aux['infer_q_params']) == len(aux['infer_p_params'])
            for i, (q_params, p_params) in enumerate(zip(aux['infer_q_params'],
                                                         aux['infer_p_params'])):
                kld_infer = kld_q_vs_p(q_params, p_params)
                lambda_infer = self.lambda_infer(current_step)
                loss = loss + lambda_infer * kld_infer
                logs['kld_infer_{}'.format(i)] = kld_infer
                logs['lambda_kld_infer'] = lambda_infer

        if 'updates' in aux:
            l2_res = l2_residual(aux['updates'])
            lambda_l2_res = self.lambda_l2_res(current_step)
            loss = loss + lambda_l2_res * l2_res
            logs['l2_res'] = l2_res
            logs['lambda_l2_res'] = lambda_l2_res

        logs['loss'] = loss
        return loss, logs


# ----------------------------------------------------------------------------
# pure-JAX reference for verification
# ----------------------------------------------------------------------------
def _ref_forward(model, preds, batch, aux, current_step):
    T = preds.shape[1]
    targs = batch['dynamic'][0][:, -T:, ...]
    masks = batch['dynamic_mask'][0][:, -T:, ...]
    pm, tm = preds * masks, targs * masks
    dist = jnp.sum((pm - tm) ** 2) / (jnp.sum(masks > 0) + 1)
    loss = dist * model.dist_scale

    def split(raw):
        d = raw.shape[-1] // 2
        return raw[..., :d], jax.nn.softplus(raw[..., d:]) + EPS

    loc, scale = split(aux['state_params'])
    kld_state = jnp.mean(-jnp.log(scale) + 0.5 * (scale ** 2 + loc ** 2) - 0.5)
    loss = loss + model.lambda_state(current_step) * kld_state

    for q, p in zip(aux['infer_q_params'], aux['infer_p_params']):
        ql, qs = split(q)
        plc, ps = split(p)
        kld = jnp.mean(jnp.log(ps) - jnp.log(qs)
                       + (qs ** 2 + (ql - plc) ** 2) / (2 * ps ** 2) - 0.5)
        loss = loss + model.lambda_infer(current_step) * kld

    l2_res = jnp.mean(jnp.sqrt(jnp.sum(aux['updates'] ** 2, axis=2)))
    loss = loss + model.lambda_l2_res(current_step) * l2_res
    return loss


if __name__ == "__main__":
    key = jax.random.PRNGKey(0)
    ks = jax.random.split(key, 8)

    B, T_full, T, C, H, W = 2, 6, 4, 4, 16, 16   # preds: (2, 4, 4, 16, 16)
    LATB, LATT, LATD = 2, 8, 64                   # raw gaussian params: (2, 8, 64)

    preds = jax.random.normal(ks[0], (B, T, C, H, W), jnp.float32)
    dynamic = jax.random.normal(ks[1], (B, T_full, C, H, W), jnp.float32)
    dyn_mask = (jax.random.uniform(ks[2], (B, T_full, C, H, W)) > 0.3).astype(jnp.float32)
    state_params = jax.random.normal(ks[3], (LATB, LATT, LATD), jnp.float32)
    infer_q = [jax.random.normal(ks[4], (LATB, LATT, LATD), jnp.float32),
               jax.random.normal(ks[5], (LATB, LATT, LATD), jnp.float32)]
    infer_p = [jax.random.normal(ks[6], (LATB, LATT, LATD), jnp.float32),
               jax.random.normal(ks[7], (LATB, LATT, LATD), jnp.float32)]
    updates = jax.random.normal(jax.random.PRNGKey(42), (B, T, C, H, W), jnp.float32)

    batch = {'dynamic': [dynamic], 'dynamic_mask': [dyn_mask]}
    aux = {'state_params': state_params,
           'infer_q_params': infer_q,
           'infer_p_params': infer_p,
           'updates': updates}

    setting = {
        'name': 'masked',
        'args': {'distance_type': 'L2', 'rescale': False},
        'state_shedule': {'start_step': 0, 'end_step': 100,
                          'start_weight': 0.0, 'end_weight': 1e-3},
        'inference_shedule': {'start_step': 0, 'end_step': 100,
                              'start_weight': 0.0, 'end_weight': 1e-3},
        'residuals_shedule': {'start_step': 0, 'end_step': 100,
                              'start_weight': 0.0, 'end_weight': 1e-2},
        'dist_scale': 1,
        'ndvi': False,
    }

    model = BaseLossPallas(setting)
    loss, logs = model(preds, batch, aux, current_step=50)
    loss = jax.block_until_ready(loss)

    ref = jax.block_until_ready(_ref_forward(model, preds, batch, aux, 50))
    assert jnp.allclose(loss, ref, rtol=1e-5, atol=1e-5), (loss, ref)

    print("KERNEL_OK")
</pallas_src>

<mosaic_0001>
module attributes {stable_mosaic.version = 11 : i64} {
  func.func @_masked_l2_kernel(%arg0: i32, %arg1: i32, %arg2: memref<4x8x128xf32, #tpu.memory_space<vmem>>, %arg3: memref<4x8x128xf32, #tpu.memory_space<vmem>>, %arg4: memref<4x8x128xf32, #tpu.memory_space<vmem>>, %arg5: memref<8x128xf32, #tpu.memory_space<vmem>>, %arg6: memref<8x128xf32, #tpu.memory_space<vmem>>) attributes {dimension_semantics = [#tpu.dimension_semantics<parallel>, #tpu.dimension_semantics<arbitrary>], iteration_bounds = array<i64: 2, 1>, scalar_prefetch = 0 : i64, scratch_operands = 0 : i64, tpu.core_type = #tpu.core_type<tc>, window_params = [{transform_indices = @transform_0, window_bounds = array<i64: 4, 8, 128>}, {transform_indices = @transform_1, window_bounds = array<i64: 4, 8, 128>}, {transform_indices = @transform_2, window_bounds = array<i64: 4, 8, 128>}, {transform_indices = @transform_3, window_bounds = array<i64: 8, 128>}, {transform_indices = @transform_4, window_bounds = array<i64: 8, 128>}]} {
    %c0_i32 = arith.constant 0 : i32
    %0 = arith.cmpi eq, %arg1, %c0_i32 : i32
    %1 = arith.extui %0 : i1 to i32
    %c0_i32_0 = arith.constant 0 : i32
    %2 = arith.cmpi ne, %1, %c0_i32_0 : i32
    scf.if %2 {
      %cst_19 = arith.constant 0.000000e+00 : f32
      %21 = vector.broadcast %cst_19 : f32 to vector<8x128xf32>
      %c0_20 = arith.constant 0 : index
      %c0_21 = arith.constant 0 : index
      %22 = vector.load %arg5[%c0_20, %c0_21] : memref<8x128xf32, #tpu.memory_space<vmem>>, vector<8x128xf32>
      tpu.vector_store %arg5[%c0_20, %c0_21], %21 {strides = array<i32>} : memref<8x128xf32, #tpu.memory_space<vmem>>, vector<8x128xf32>,
      %cst_22 = arith.constant 0.000000e+00 : f32
      %23 = vector.broadcast %cst_22 : f32 to vector<8x128xf32>
      %c0_23 = arith.constant 0 : index
      %c0_24 = arith.constant 0 : index
      %24 = vector.load %arg6[%c0_23, %c0_24] : memref<8x128xf32, #tpu.memory_space<vmem>>, vector<8x128xf32>
      tpu.vector_store %arg6[%c0_23, %c0_24], %23 {strides = array<i32>} : memref<8x128xf32, #tpu.memory_space<vmem>>, vector<8x128xf32>,
    } else {
    }
    %c0 = arith.constant 0 : index
    %c0_1 = arith.constant 0 : index
    %c0_2 = arith.constant 0 : index
    %3 = vector.load %arg2[%c0, %c0_1, %c0_2] : memref<4x8x128xf32, #tpu.memory_space<vmem>>, vector<4x8x128xf32>
    %c0_3 = arith.constant 0 : index
    %c0_4 = arith.constant 0 : index
    %c0_5 = arith.constant 0 : index
    %4 = vector.load %arg3[%c0_3, %c0_4, %c0_5] : memref<4x8x128xf32, #tpu.memory_space<vmem>>, vector<4x8x128xf32>
    %c0_6 = arith.constant 0 : index
    %c0_7 = arith.constant 0 : index
    %c0_8 = arith.constant 0 : index
    %5 = vector.load %arg4[%c0_6, %c0_7, %c0_8] : memref<4x8x128xf32, #tpu.memory_space<vmem>>, vector<4x8x128xf32>
    %6 = arith.subf %3, %4 : vector<4x8x128xf32>
    %7 = arith.mulf %6, %5 : vector<4x8x128xf32>
    %c0_9 = arith.constant 0 : index
    %c0_10 = arith.constant 0 : index
    %8 = vector.load %arg5[%c0_9, %c0_10] : memref<8x128xf32, #tpu.memory_space<vmem>>, vector<8x128xf32>
    %9 = arith.mulf %7, %7 : vector<4x8x128xf32>
    %cst = arith.constant dense<0.000000e+00> : vector<8x128xf32>
    %10 = vector.multi_reduction <add>, %9, %cst [0] : vector<4x8x128xf32> to vector<8x128xf32>
    %11 = arith.addf %8, %10 : vector<8x128xf32>
    %c0_11 = arith.constant 0 : index
    %c0_12 = arith.constant 0 : index
    %12 = vector.load %arg5[%c0_11, %c0_12] : memref<8x128xf32, #tpu.memory_space<vmem>>, vector<8x128xf32>
    tpu.vector_store %arg5[%c0_11, %c0_12], %11 {strides = array<i32>} : memref<8x128xf32, #tpu.memory_space<vmem>>, vector<8x128xf32>,
    %c0_13 = arith.constant 0 : index
    %c0_14 = arith.constant 0 : index
    %13 = vector.load %arg6[%c0_13, %c0_14] : memref<8x128xf32, #tpu.memory_space<vmem>>, vector<8x128xf32>
    %cst_15 = arith.constant 0.000000e+00 : f32
    %14 = vector.broadcast %cst_15 : f32 to vector<4x8x128xf32>
    %15 = arith.cmpf ogt, %5, %14 : vector<4x8x128xf32>
    %16 = arith.extui %15 : vector<4x8x128xi1> to vector<4x8x128xi32>
    %17 = arith.sitofp %16 : vector<4x8x128xi32> to vector<4x8x128xf32>
    %cst_16 = arith.constant dense<0.000000e+00> : vector<8x128xf32>
    %18 = vector.multi_reduction <add>, %17, %cst_16 [0] : vector<4x8x128xf32> to vector<8x128xf32>
    %19 = arith.addf %13, %18 : vector<8x128xf32>
    %c0_17 = arith.constant 0 : index
    %c0_18 = arith.constant 0 : index
    %20 = vector.load %arg6[%c0_17, %c0_18] : memref<8x128xf32, #tpu.memory_space<vmem>>, vector<8x128xf32>
    tpu.vector_store %arg6[%c0_17, %c0_18], %19 {strides = array<i32>} : memref<8x128xf32, #tpu.memory_space<vmem>>, vector<8x128xf32>,
    return
  }
  func.func @transform_0(%arg0: i32, %arg1: i32) -> (i32, i32, i32) {
    %c1_i32 = arith.constant 1 : i32
    %0 = arith.muli %arg0, %c1_i32 : i32
    %1 = arith.addi %0, %arg1 : i32
    %c0_i32 = arith.constant 0 : i32
    %c0_i32_0 = arith.constant 0 : i32
    %c0_i32_1 = arith.constant 0 : i32
    return %1, %c0_i32, %c0_i32_0 : i32, i32, i32
  }
  func.func @transform_1(%arg0: i32, %arg1: i32) -> (i32, i32, i32) {
    %c1_i32 = arith.constant 1 : i32
    %0 = arith.muli %arg0, %c1_i32 : i32
    %1 = arith.addi %0, %arg1 : i32
    %c0_i32 = arith.constant 0 : i32
    %c0_i32_0 = arith.constant 0 : i32
    %c0_i32_1 = arith.constant 0 : i32
    return %1, %c0_i32, %c0_i32_0 : i32, i32, i32
  }
  func.func @transform_2(%arg0: i32, %arg1: i32) -> (i32, i32, i32) {
    %c1_i32 = arith.constant 1 : i32
    %0 = arith.muli %arg0, %c1_i32 : i32
    %1 = arith.addi %0, %arg1 : i32
    %c0_i32 = arith.constant 0 : i32
    %c0_i32_0 = arith.constant 0 : i32
    %c0_i32_1 = arith.constant 0 : i32
    return %1, %c0_i32, %c0_i32_0 : i32, i32, i32
  }
  func.func @transform_3(%arg0: i32, %arg1: i32) -> (i32, i32) {
    %c0_i32 = arith.constant 0 : i32
    %c0_i32_0 = arith.constant 0 : i32
    return %arg0, %c0_i32 : i32, i32
  }
  func.func @transform_4(%arg0: i32, %arg1: i32) -> (i32, i32) {
    %c0_i32 = arith.constant 0 : i32
    %c0_i32_0 = arith.constant 0 : i32
    return %arg0, %c0_i32 : i32, i32
  }
}

</mosaic_0001>

<bundles_post_ra>
// kernel: tpu_custom_call.1
= control target key start
LH: loop header
LB: loop body
LE: loop exit
PB: predicated region body
PF: predicated region fallthrough
CT: control target
= control target key end

     0   :  { %s1112_s0 = inlined_call_operand.hbm [shape: f32[8,8,128], index: 0, kind: input, shape index: {}]   ;;  %s1113_s1 = inlined_call_operand.hbm [shape: f32[8,8,128], index: 1, kind: input, shape index: {}]   ;;  %s1114_s2 = inlined_call_operand.hbm [shape: f32[8,8,128], index: 2, kind: input, shape index: {}]   ;;  %s1115_s3 = inlined_call_operand.hbm [shape: f32[16,128], index: 3, kind: output, shape index: {0}]   ;;  %s1116_s4 = inlined_call_operand.hbm [shape: f32[16,128], index: 4, kind: output, shape index: {1}]  }
   0x1   :  { %1123 = sst [smem:[#allocation21_spill]] %s1113_s1 }
   0x2   :  { %10 = vsyncpa [#allocation3], 0 }
   0x3   :  { %12 = vsyncpa [#allocation3 + $0x1], 0 }
   0x4   :  { %13 = vsyncpa [#allocation6], 0 }
   0x5   :  { %15 = vsyncpa [#allocation6 + $0x1], 0 }
   0x6   :  { %16 = vsyncpa [#allocation4], 0 }
   0x7   :  { %18 = vsyncpa [#allocation4 + $0x1], 0 }
   0x8   :  { %19 = vsyncpa [#allocation10], 0 }
   0x9   :  { %21 = vsyncpa [#allocation10 + $0x1], 0  ;;  %s933_s15 = smov 0   ;;  %s935_s16 = smov 0  }
   0xa   :  { %s937_s17 = smov 0   ;;  %s939_s18 = smov 0  }
   0xb   :  { %s941_s19 = smov 0   ;;  %s943_s20 = smov 0  }
   0xc LB: > { %1124 = sst [smem:[#allocation15_spill]] %s891_s17  ;;  %s964_s21 = sadd.s32 4294967295, %s903_s20   ;;  %s903_s20 = sphi %s943_s20, %s27_s20   ;;  %s899_s19 = sphi %s941_s19, %s1142_s19   ;;  %s895_s18 = sphi %s939_s18, %s1141_s18   ;;  %s891_s17 = sphi %s937_s17, %s1140_s17   ;;  %s887_s16 = sphi %s935_s16, %s1144_s16   ;;  %s883_s15 = sphi %s933_s15, %s1143_s15  }
   0xd   : > { %1125 = sst [smem:[#allocation16_spill]] %s899_s19  ;;  %s584_s22 = sadd.s32 4294967294, %s903_s20  }
   0xe   : > { %1126 = sst [smem:[#allocation17_spill]] %s903_s20  ;;  %s39_s23 = sadd.s32 1, %s899_s19 }
   0xf   : > { %s48_s24 = sadd.s32 1, %s891_s17  ;;  %p41_p0 = scmp.ge.s32.totalorder %s39_s23, 2 }
  0x10   : > { %p55_p1 = scmp.ne.s32.totalorder %s891_s17, %s887_s16  ;;  %p56_p2 = scmp.eq.s32.totalorder %s903_s20, 0 }
  0x11   : > { %p61_p3 = scmp.ne.s32.totalorder %s887_s16, %s883_s15  ;;  %s1146_s23 = smov (%p41_p0, %s39_s23), 0 }
  0x12   : > { %1127 = sst [smem:[#allocation18_spill]] %s1146_s23  ;;  %p976_p4 = por %p56_p2, %p55_p1 }
  0x13   : > { %p62_p5 = scmp.eq.s32.totalorder %s964_s21, 0  ;;  %s45_s26 = ssub.s32 %s899_s19, %s1146_s23 }
  0x14   : > { %p141_p6 = scmp.eq.s32.totalorder %s964_s21, 1  ;;  %p46_p7 = scmp.eq.s32.totalorder %s45_s26, 0 }
  0x15   : > { %p984_p8 = por %p62_p5, %p61_p3  ;;  %p147_p10 = scmp.eq.s32.totalorder %s584_s22, 1 }
  0x16   : > { %p988_p9 = por %p141_p6, %p55_p1  ;;  %p586_p12 = scmp.ge.s32.totalorder %s903_s20, 2 }
  0x17   : > { %s993_s29 = scalar_select %p46_p7, %s891_s17, %s48_s24  }
  0x18   : > { %p995_p11 = por %p147_p10, %p61_p3  ;;  %p642_p13 = scmp.lt.s32.totalorder %s903_s20, 2 }
  0x19   : > { %1131 = sst [smem:[#allocation19_spill]] %s993_s29  ;;  %s193_s5 = sand.u32 1, %s891_s17  }
  0x1a   : > { %s1132_s30 = scalar_select %p995_p11, 1, 0 }
  0x1b   : > { %s1002_s6 = sshll.u32 %s193_s5, 5  ;;  %s612_s7 = sshll.u32 %s899_s19, 5 }
  0x1c   : > { %1133 = sst [smem:[#allocation20_spill]] %s1132_s30  ;;  %p1007_p0 = pnand %p642_p13, %p976_p4 }
  0x1d   : > { %s216_s9 = sand.u32 1, %s903_s20   ;;  %s1135_s1 = sld [smem:[#allocation21_spill]] }
  0x1e   : > { %s220_s14 = scalar_lea.vmem [#allocation5], %s1002_s6  ;;  %s217_s24 = scalar_lea.sflag [#allocation6], %s216_s9 }
  0x1f   : > { %s229_s22 = sshll.u32 %s220_s14, 4  ;;  %s905_s26 = smov 128   ;;  %s230_s22 = int_to_ptr.vmem [resolvable:$true] %s229_s22 }
  0x20   : > { %s906_s25 = smov 8   ;;  %p596_p1 = scmp.ge.s32.totalorder %s903_s20, 1 }
  0x21   : > { %p260_p2 = scmp.lt.s32.totalorder %s903_s20, 3  ;;  %s194_s9 = scalar_lea.sflag [#allocation3], %s193_s5 }
  0x22   : > { %s249_s29 = scalar_lea.hbm %s1114_s2, %s612_s7  ;;  %s243_s20 = scalar_lea.vmem [#allocation7], %s1002_s6 }
  0x23   : > { %s226_s12 = scalar_lea.hbm %s1135_s1, %s612_s7  ;;  %p1020_p3 = pnand %p596_p1, %p260_p2 }
  0x24   : > { %s227_s13 = sshll.u32 %s226_s12, 4  ;;  %s203_s12 = scalar_lea.hbm %s1112_s0, %s612_s7  ;;  %s228_s13 = int_to_ptr.hbm [resolvable:$true] %s227_s13 }
  0x25   : > { %631 = dma.hbm_to_vmem [thread:$0]  (!%p1007_p0), %s228_s13, 512, %s230_s22, %s217_s24, %s905_s26, %s905_s26, %s906_s25  }
  0x26   : > { %s204_s14 = sshll.u32 %s203_s12, 4  ;;  %s197_s1 = scalar_lea.vmem [#allocation2], %s1002_s6  ;;  %s205_s14 = int_to_ptr.hbm [resolvable:$true] %s204_s14 }
  0x27   : > { %s206_s19 = sshll.u32 %s197_s1, 4  ;;  %s250_s17 = sshll.u32 %s249_s29, 4  ;;  %s207_s19 = int_to_ptr.vmem [resolvable:$true] %s206_s19  ;;  %s251_s17 = int_to_ptr.hbm [resolvable:$true] %s250_s17 }
  0x28   : > { %628 = dma.hbm_to_vmem [thread:$0]  (!%p1007_p0), %s205_s14, 512, %s207_s19, %s194_s9, %s905_s26, %s905_s26, %s906_s25  }
  0x29   : > { %s252_s30 = sshll.u32 %s243_s20, 4  ;;  %264 = sbr.rel (%p1020_p3) target bundleno = 80 (0x50), region = 32  ;;  %s253_s30 = int_to_ptr.vmem [resolvable:$true] %s252_s30 }
  0x2a   : > { %634 = dma.hbm_to_vmem [thread:$0]  (!%p1007_p0), %s251_s17, 512, %s253_s30, %s217_s24, %s905_s26, %s905_s26, %s906_s25  }
  0x2b   : > { %s1039_s1 = sand.u32 (!%p1020_p3), 1, %s887_s16  }
  0x2c   : > { %s597_s19 = sshll.u32 (!%p1020_p3), %s1039_s1, 5  ;;  %s267_s5 = scalar_lea.sflag (!%p1020_p3), [#allocation3], %s1039_s1 }
  0x2d   : > { %s270_s10 = scalar_lea.vmem (!%p1020_p3), [#allocation2], %s597_s19 }
  0x2e   : > { %866 = dma.done.wait (%p984_p8), %s267_s5, 512  }
  0x2f   : > { %868 = vsyncadd (%p984_p8), %s267_s5, 4294966784  ;;  %s276_s17 = sand.u32 1, %s964_s21   ;;  %s280_s23 = scalar_lea.vmem [#allocation5], %s597_s19 }
  0x30   : > { %s277_s20 = scalar_lea.sflag [#allocation6], %s276_s17 }
  0x31   : > { %870 = dma.done.wait (%p984_p8), %s277_s20, 1024  }
  0x32   : > { %872 = vsyncadd (%p984_p8), %s277_s20, 4294966272  ;;  %v343_v0 = vld [vmem:[%s270_s10] sm:$0xff]  ;;  %v344_v1 = vld [vmem:[%s270_s10 + $0x8] sm:$0xff]  ;;  %s290_s29 = scalar_lea.vmem [#allocation7], %s597_s19  ;;  %s600_s21 = sshll.u32 %s1039_s1, 3  ;;  %v907_v20 = vmov 0.0  }
  0x33   : > { %v345_v2 = vld [vmem:[%s270_s10 + $0x10] sm:$0xff]  ;;  %v346_v3 = vld [vmem:[%s270_s10 + $0x18] sm:$0xff]  ;;  %v347_v4 = vld [vmem:[%s280_s23] sm:$0xff]  ;;  %s608_s27 = sshll.u32 %s895_s18, 3  ;;  %s330_s26 = scalar_lea.vmem [#allocation9], %s600_s21 }
  0x34   : > { %v348_v5 = vld [vmem:[%s280_s23 + $0x8] sm:$0xff]  ;;  %v349_v6 = vld [vmem:[%s280_s23 + $0x10] sm:$0xff]  ;;  %v350_v7 = vld [vmem:[%s280_s23 + $0x18] sm:$0xff]  ;;  %v355_v9 = vsub.f32 %v343_v0, %v347_v4  ;;  %s421_s7 = scalar_lea.hbm %s1116_s4, %s608_s27  ;;  %s407_s24 = scalar_lea.hbm %s1115_s3, %s608_s27 }
  0x35   : > { %v351_v8 = vld [vmem:[%s290_s29] sm:$0xff]  ;;  %v356_v10 = vsub.f32 %v344_v1, %v348_v5  ;;  %v352_v11 = vld [vmem:[%s290_s29 + $0x8] sm:$0xff]  ;;  %v353_v12 = vld [vmem:[%s290_s29 + $0x10] sm:$0xff]  ;;  %v357_v14 = vsub.f32 %v345_v2, %v349_v6  ;;  %v358_v15 = vsub.f32 %v346_v3, %v350_v7  ;;  %s423_s25 = sshll.u32 %s330_s26, 4  ;;  %s425_s11 = sshll.u32 %s421_s7, 4  ;;  %s424_s25 = int_to_ptr.vmem [resolvable:$true] %s423_s25  ;;  %s426_s11 = int_to_ptr.hbm [resolvable:$true] %s425_s11 }
  0x36   : > { %v354_v13 = vld [vmem:[%s290_s29 + $0x18] sm:$0xff]  ;;  %vm374_vm0 = vcmp.gt.f32.partialorder %v351_v8, 0.0  ;;  %v359_v16 = vmul.f32 %v355_v9, %v351_v8  ;;  %vm375_vm1 = vcmp.gt.f32.partialorder %v352_v11, 0.0  ;;  %vm376_vm2 = vcmp.gt.f32.partialorder %v353_v12, 0.0  ;;  %s323_s12 = scalar_lea.vmem [#allocation8], %s600_s21  ;;  %s411_s9 = sshll.u32 %s407_s24, 4  ;;  %s1062_s9 = int_to_ptr.hbm [resolvable:$true] %s411_s9 }
  0x37   : > { %v360_v17 = vmul.f32 %v356_v10, %v352_v11  ;;  %v361_v18 = vmul.f32 %v357_v14, %v353_v12  ;;  %v362_v19 = vmul.f32 %v358_v15, %v354_v13  ;;  %vm377_vm3 = vcmp.gt.f32.partialorder %v354_v13, 0.0  ;;  %s409_s14 = sshll.u32 %s323_s12, 4  ;;  %s397_s13 = scalar_lea.sflag [#allocation10], %s1039_s1  ;;  %s1060_s14 = int_to_ptr.vmem [resolvable:$true] %s409_s14 }
  0x38   : > { %v602_v21 = vsel %vm374_vm0, 1.0, %v907_v20  ;;  %v364_v22 = vmul.f32 %v359_v16, %v359_v16  ;;  %v603_v24 = vsel %vm375_vm1, 1.0, %v907_v20  ;;  %v604_v25 = vsel %vm376_vm2, 1.0, %v907_v20  ;;  %s799_s22 = sshra.s32 %s426_s11, 4  ;;  %s805_s17 = scalar_lea.hbm %s1116_s4, 16  ;;  %s800_s22 = int_to_ptr.hbm [resolvable:$true] %s799_s22 }
  0x39   : > { %v365_v23 = vmul.f32 %v360_v17, %v360_v17  ;;  %v366_v26 = vmul.f32 %v361_v18, %v361_v18  ;;  %v386_v27 = vadd.f32 %v603_v24, %v602_v21  ;;  %v367_v28 = vmul.f32 %v362_v19, %v362_v19  ;;  %s801_s19 = scalar_lea.hbm %s800_s22, 8  ;;  %p806_p7 = scmp.lt.s32.totalorder %s800_s22, %s1116_s4 }
  0x3a   : > { %v605_v30 = vsel %vm377_vm3, 1.0, %v907_v20  ;;  %p802_p4 = scmp.ne.s32.totalorder %s800_s22, %s801_s19  ;;  %p807_p8 = scmp.lt.s32.totalorder %s805_s17, %s801_s19 }
  0x3b   : > { %v368_v29 = vadd.f32 %v365_v23, %v364_v22  ;;  %v387_v31 = vadd.f32 %v604_v25, %v386_v27 }
  0x3c   : > { %p803_p5 = pnand %p802_p4, %p988_p9  ;;  %p808_p10 = por %p807_p8, %p806_p7 }
  0x3d   : > { %v369_v32 = vadd.f32 %v368_v29, %v366_v26  ;;  %v388_v33 = vadd.f32 %v605_v30, %v387_v31 }
  0x3e   : > { %p804_p6 = pneg %p803_p5 }
  0x3f   : > { %v370_v34 = vadd.f32 %v369_v32, %v367_v28  ;;  %390 = vst [vmem:[%s330_s26] sm:$0xff] %v388_v33 }
  0x40   : > { %p809_p13 = pnand %p808_p10, %p804_p6 }
  0x41   : > { %372 = vst [vmem:[%s323_s12] sm:$0xff] %v370_v34 }
  0x42   : > { %812 = shalt.err (!%p809_p13)
}
  0x43   : > { %622 = dma.vmem_to_hbm [thread:$0]  (%p988_p9), %s424_s25, 128, %s426_s11, %s397_s13  }
  0x44   : > { %s392_s29 = scalar_lea.sflag [#allocation4], %s1039_s1  ;;  %s827_s21 = sshra.s32 %s1062_s9, 4  ;;  %s828_s21 = int_to_ptr.hbm [resolvable:$true] %s827_s21 }
  0x45   : > { %s829_s27 = scalar_lea.hbm %s828_s21, 8  ;;  %s833_s7 = scalar_lea.hbm %s1115_s3, 16 }
  0x46   : > { %p830_p0 = scmp.ne.s32.totalorder %s828_s21, %s829_s27  ;;  %p834_p3 = scmp.lt.s32.totalorder %s828_s21, %s1115_s3 }
  0x47   : > { %p835_p4 = scmp.lt.s32.totalorder %s833_s7, %s829_s27 }
  0x48   : > { %p831_p1 = pnand %p830_p0, %p988_p9 }
  0x49   : > { %p836_p5 = por %p835_p4, %p834_p3 }
  0x4a   : > { %p832_p2 = pneg %p831_p1 }
  0x4c   : > { %p837_p6 = pnand %p836_p5, %p832_p2 }
  0x4e   : > { %840 = shalt.err (!%p837_p6)
}
  0x4f   : > { %621 = dma.vmem_to_hbm [thread:$0]  (%p988_p9), %s1060_s14, 128, %s1062_s9, %s392_s29  }
  0x50 PF: > { %s1138_s24 = sld [smem:[#allocation17_spill]]  ;;  %s437_s26 = sand.u32 1, %s883_s15  }
  0x51   : > { %p636_p7 = pnand %p586_p12, %p995_p11  ;;  %s438_s25 = scalar_lea.sflag [#allocation4], %s437_s26 }
  0x53   : > { %p637_p8 = pneg %p636_p7 }
  0x55   : > { %874 = dma.done.wait (%p637_p8), %s438_s25, 128  }
  0x56   : > { %876 = vsyncadd (%p637_p8), %s438_s25, 4294967168  ;;  %s448_s11 = scalar_lea.sflag [#allocation10], %s437_s26 }
  0x57   : > { %878 = dma.done.wait (%p637_p8), %s448_s11, 128  }
  0x58   : > { %880 = vsyncadd (%p637_p8), %s448_s11, 4294967168  ;;  %s27_s20 = sadd.s32 1, %s1138_s24   ;;  %s1139_s28 = sld [smem:[#allocation15_spill]] }
  0x59   : > { %p24_p10 = scmp.ge.s32.totalorder %s27_s20, 4   ;;  %s1140_s17 = sld [smem:[#allocation19_spill]] }
  0x5a   : > { %s1141_s18 = sld [smem:[#allocation16_spill]]  ;;  %s1143_s15 = smov %s887_s16 }
  0x5b   : > { %s1142_s19 = sld [smem:[#allocation18_spill]]  ;;  %26 = sbr.rel (!%p24_p10) target bundleno = 12 (0xc), region = 122 }
  0x5e   : > { %s1144_s16 = smov %s1139_s28 }
  0x60   :  { %454 = vsyncpa [#allocation3], 1 }
  0x61   :  { %456 = vsyncpa [#allocation3 + $0x1], 1 }
  0x62   :  { %457 = vsyncpa [#allocation6], 1 }
  0x63   :  { %459 = vsyncpa [#allocation6 + $0x1], 1 }
  0x64   :  { %460 = vsyncpa [#allocation4], 1 }
  0x65   :  { %462 = vsyncpa [#allocation4 + $0x1], 1 }
  0x66   :  { %463 = vsyncpa [#allocation10], 1 }
  0x67   :  { %465 = vsyncpa [#allocation10 + $0x1], 1 }

</bundles_post_ra>
